<compile_context>
chip_gen: v7x
topology: tpu7x:2x2x1
jax: 0.10.0
libtpu: 0.0.40
codegen_flags: <defaults>
</compile_context>

<pallas_src>
import functools

import jax
import jax.numpy as jnp
from jax.experimental import pallas as pl
from jax.experimental.pallas import tpu as pltpu

TILE_B_MAX = 2048  # rows per grid step; a few MiB double-buffered, well under VMEM


def _round_up(n, m):
    return (n + m - 1) // m * m


def _advsum_kernel(x_ref, w1_ref, b1_ref, w2_ref, b2_ref, ws_ref, s_ref,
                   *, batch_real, tile_b):
    """Pass 1: per-tile partial sum of adv over (rows, output columns)."""
    i = pl.program_id(0)

    x = x_ref[...].astype(jnp.bfloat16)                                   # (Tb, F)
    h1 = jnp.tanh(jnp.dot(x, w1_ref[...], preferred_element_type=jnp.float32)
                  + b1_ref[...])                                          # (Tb, H) f32
    h2 = jnp.tanh(jnp.dot(h1.astype(jnp.bfloat16), w2_ref[...],
                          preferred_element_type=jnp.float32)
                  + b2_ref[...])                                          # (Tb, H) f32

    # Per-row sum over adv columns comes out of the MXU for free:
    #   rowsum[r] = h2[r, :] @ sum_j wa[:, j]      (adv bias handled in wrapper)
    rowsum = jnp.dot(h2.astype(jnp.bfloat16), ws_ref[...],
                     preferred_element_type=jnp.float32)                  # (Tb, 1)

    last = pl.num_programs(0) - 1

    @pl.when(i == last)
    def _():
        # Padded batch rows are NOT zero after layer 1 (tanh(b1) != 0): mask them,
        # but only on the last tile.
        row_ids = jax.lax.broadcasted_iota(jnp.int32, rowsum.shape, 0) + i * tile_b
        psum = jnp.sum(jnp.where(row_ids < batch_real, rowsum, 0.0))
        s_ref[...] = jnp.full((1, 1, 128), psum, dtype=jnp.float32)

    @pl.when(i != last)
    def _():
        # Interior tiles: unmasked (no iota / compare / select VPU work).
        s_ref[...] = jnp.full((1, 1, 128), jnp.sum(rowsum), dtype=jnp.float32)


def _fwd_kernel(x_ref, w1_ref, b1_ref, w2_ref, b2_ref, wh_ref, bh_ref, o_ref):
    """Pass 2: recompute the tiny forward, write the FINAL result.

    wh = wa + wv (broadcast), bh = ba + bv - mean(adv) were folded in the
    wrapper, so one matmul + bias is the entire dueling head.
    """
    x = x_ref[...].astype(jnp.bfloat16)                                   # (Tb, F)
    h1 = jnp.tanh(jnp.dot(x, w1_ref[...], preferred_element_type=jnp.float32)
                  + b1_ref[...])                                          # (Tb, H)
    h2 = jnp.tanh(jnp.dot(h1.astype(jnp.bfloat16), w2_ref[...],
                          preferred_element_type=jnp.float32)
                  + b2_ref[...])                                          # (Tb, H)
    o_ref[...] = (jnp.dot(h2.astype(jnp.bfloat16), wh_ref[...],
                          preferred_element_type=jnp.float32)
                  + bh_ref[...]).astype(o_ref.dtype)                      # (Tb, O)


@jax.jit
def dueling_net(x, params):
    w1, b1, w2, b2, wa, ba, wv, bv = params
    B, F = x.shape
    H = w1.shape[1]
    O = wa.shape[1]

    # bf16 weights feed the MXU; biases / elementwise stay f32.
    w1b = w1.astype(jnp.bfloat16)
    w2b = w2.astype(jnp.bfloat16)

    # Batch tiling: large tiles (the per-step ~0.35us overhead dominates the
    # tiny F=16/H=32 matmuls otherwise).
    tile_b = min(_round_up(B, 8), TILE_B_MAX)
    b_pad = _round_up(B, tile_b)
    n_tiles = b_pad // tile_b
    x_p = jnp.pad(x, ((0, b_pad - B), (0, 0)))

    wspec = [
        pl.BlockSpec((tile_b, F), lambda i: (i, 0)),   # x tile (pipelined)
        pl.BlockSpec((F, H), lambda i: (0, 0)),        # weights VMEM-resident
        pl.BlockSpec((1, H), lambda i: (0, 0)),
        pl.BlockSpec((H, H), lambda i: (0, 0)),
        pl.BlockSpec((1, H), lambda i: (0, 0)),
    ]
    wbytes = w1b.size * 2 + w2b.size * 2 + (b1.size + b2.size) * 4

    # ----- Pass 1: per-tile partial sums of adv (tiny output, parallel). -----
    ws = jnp.sum(wa, axis=1, keepdims=True).astype(jnp.bfloat16)          # (H, 1)

    partials = pl.pallas_call(
        functools.partial(_advsum_kernel, batch_real=B, tile_b=tile_b),
        out_shape=jax.ShapeDtypeStruct((n_tiles, 1, 128), jnp.float32),
        grid_spec=pltpu.PrefetchScalarGridSpec(
            num_scalar_prefetch=0,
            grid=(n_tiles,),
            in_specs=wspec + [pl.BlockSpec((H, 1), lambda i: (0, 0))],
            out_specs=pl.BlockSpec((1, 1, 128), lambda i: (i, 0, 0)),
        ),
        compiler_params=pltpu.CompilerParams(
            dimension_semantics=("parallel",)),
        cost_estimate=pl.CostEstimate(
            flops=2 * b_pad * (F * H + H * H + H),
            transcendentals=2 * b_pad * H,
            bytes_accessed=x_p.size * 4 + wbytes + ws.size * 2 + n_tiles * 512),
    )(x_p, w1b, b1, w2b, b2, ws)

    # f32 reduction of per-tile partials; adv bias contributes B * sum(ba).
    adv_sum = jnp.sum(partials[:, 0, 0]) + B * jnp.sum(ba)
    mean_adv = adv_sum / (B * O)

    # ----- Pass 2: fused head with val and the mean folded into the bias. -----
    wh = (wa + wv).astype(jnp.bfloat16)            # (H, O): head == adv + val
    bh = ba + bv - mean_adv                        # (1, O): mean-subtract folded in

    out_p = pl.pallas_call(
        _fwd_kernel,
        out_shape=jax.ShapeDtypeStruct((b_pad, O), jnp.float32),
        grid_spec=pltpu.PrefetchScalarGridSpec(
            num_scalar_prefetch=0,
            grid=(n_tiles,),
            in_specs=wspec + [pl.BlockSpec((H, O), lambda i: (0, 0)),
                              pl.BlockSpec((1, O), lambda i: (0, 0))],
            out_specs=pl.BlockSpec((tile_b, O), lambda i: (i, 0)),
        ),
        compiler_params=pltpu.CompilerParams(
            dimension_semantics=("parallel",)),
        cost_estimate=pl.CostEstimate(
            flops=2 * b_pad * (F * H + H * H + H * O),
            transcendentals=2 * b_pad * H,
            bytes_accessed=x_p.size * 4 + wbytes + wh.size * 2 + bh.size * 4
            + b_pad * O * 4),
    )(x_p, w1b, b1, w2b, b2, wh, bh)

    return out_p[:B]


def init_params(key, n_feature, n_hidden, n_output):
    # Deterministic synthetic init (PyTorch-style uniform fan-in bound).
    ks = jax.random.split(key, 8)

    def lin(kw, kb, fan_in, fan_out):
        bound = 1.0 / jnp.sqrt(fan_in)
        w = jax.random.uniform(kw, (fan_in, fan_out), jnp.float32, -bound, bound)
        b = jax.random.uniform(kb, (1, fan_out), jnp.float32, -bound, bound)
        return w, b

    w1, b1 = lin(ks[0], ks[1], n_feature, n_hidden)
    w2, b2 = lin(ks[2], ks[3], n_hidden, n_hidden)
    wa, ba = lin(ks[4], ks[5], n_hidden, n_output)
    wv, bv = lin(ks[6], ks[7], n_hidden, 1)
    return (w1, b1, w2, b2, wa, ba, wv, bv)


def reference(x, params):
    # Pure-JAX f32 reference with identical semantics to the PyTorch module.
    w1, b1, w2, b2, wa, ba, wv, bv = params
    h = jnp.tanh(x @ w1 + b1)
    h = jnp.tanh(h @ w2 + b2)
    adv = h @ wa + ba
    val = h @ wv + bv
    return val + adv - jnp.mean(adv)


if __name__ == "__main__":
    n_feature, n_hidden, n_output = 16, 32, 8
    key = jax.random.PRNGKey(0)
    kx, kp, kx2, kx3 = jax.random.split(key, 4)
    params = init_params(kp, n_feature, n_hidden, n_output)

    # Small batch (single tile, padded rows masked from the mean).
    batch = 2
    x = jax.random.normal(kx, (batch, n_feature), jnp.float32)
    out = jax.block_until_ready(dueling_net(x, params))
    ref = reference(x, params)
    assert out.shape == (batch, n_output)
    # bf16 MXU inputs with f32 accumulation -> loosened tolerance vs f32 reference.
    assert jnp.allclose(out, ref, atol=2e-2, rtol=2e-2)

    # Medium batch: single (608-row) tile with padded-row masking.
    batch2 = 600
    x2 = jax.random.normal(kx2, (batch2, n_feature), jnp.float32)
    out2 = jax.block_until_ready(dueling_net(x2, params))
    ref2 = reference(x2, params)
    assert out2.shape == (batch2, n_output)
    assert jnp.allclose(out2, ref2, atol=2e-2, rtol=2e-2)

    # Large batch: multi-tile grid, per-tile partial sums + last-tile masking.
    batch3 = 2500
    x3 = jax.random.normal(kx3, (batch3, n_feature), jnp.float32)
    out3 = jax.block_until_ready(dueling_net(x3, params))
    ref3 = reference(x3, params)
    assert out3.shape == (batch3, n_output)
    assert jnp.allclose(out3, ref3, atol=2e-2, rtol=2e-2)

    print("KERNEL_OK")
</pallas_src>

<mosaic_0001>
module attributes {stable_mosaic.version = 11 : i64} {
  func.func @_advsum_kernel(%arg0: i32, %arg1: memref<8x16xf32, #tpu.memory_space<vmem>>, %arg2: memref<16x32xbf16, #tpu.memory_space<vmem>>, %arg3: memref<1x32xf32, #tpu.memory_space<vmem>>, %arg4: memref<32x32xbf16, #tpu.memory_space<vmem>>, %arg5: memref<1x32xf32, #tpu.memory_space<vmem>>, %arg6: memref<32x1xbf16, #tpu.memory_space<vmem>>, %arg7: memref<1x1x128xf32, #tpu.memory_space<vmem>>) attributes {dimension_semantics = [#tpu.dimension_semantics<parallel>], iteration_bounds = array<i64: 1>, scalar_prefetch = 0 : i64, scratch_operands = 0 : i64, tpu.core_type = #tpu.core_type<tc>, window_params = [{transform_indices = @transform_0, window_bounds = array<i64: 8, 16>}, {pipeline_mode = #tpu.pipeline_mode<synchronous>, transform_indices = @transform_1, window_bounds = array<i64: 16, 32>}, {pipeline_mode = #tpu.pipeline_mode<synchronous>, transform_indices = @transform_2, window_bounds = array<i64: 1, 32>}, {pipeline_mode = #tpu.pipeline_mode<synchronous>, transform_indices = @transform_3, window_bounds = array<i64: 32, 32>}, {pipeline_mode = #tpu.pipeline_mode<synchronous>, transform_indices = @transform_4, window_bounds = array<i64: 1, 32>}, {pipeline_mode = #tpu.pipeline_mode<synchronous>, transform_indices = @transform_5, window_bounds = array<i64: 32, 1>}, {transform_indices = @transform_6, window_bounds = array<i64: 1, 1, 128>}]} {
    %c0 = arith.constant 0 : index
    %c0_0 = arith.constant 0 : index
    %0 = vector.load %arg1[%c0, %c0_0] : memref<8x16xf32, #tpu.memory_space<vmem>>, vector<8x16xf32>
    %1 = arith.truncf %0 : vector<8x16xf32> to vector<8x16xbf16>
    %c0_1 = arith.constant 0 : index
    %c0_2 = arith.constant 0 : index
    %2 = vector.load %arg2[%c0_1, %c0_2] : memref<16x32xbf16, #tpu.memory_space<vmem>>, vector<16x32xbf16>
    %cst = arith.constant dense<0.000000e+00> : vector<8x32xf32>
    %3 = tpu.matmul %1, %2, %cst {dimension_numbers = #tpu.dot_dimension_numbers<[1], [0], [0], [1], [0, 0, 1, 1], [], []>} : vector<8x16xbf16>, vector<16x32xbf16>, vector<8x32xf32> -> vector<8x32xf32>
    %c0_3 = arith.constant 0 : index
    %c0_4 = arith.constant 0 : index
    %4 = vector.load %arg3[%c0_3, %c0_4] : memref<1x32xf32, #tpu.memory_space<vmem>>, vector<1x32xf32>
    %5 = vector.broadcast %4 : vector<1x32xf32> to vector<8x32xf32>
    %6 = arith.addf %3, %5 : vector<8x32xf32>
    %7 = math.tanh %6 : vector<8x32xf32>
    %8 = arith.truncf %7 : vector<8x32xf32> to vector<8x32xbf16>
    %c0_5 = arith.constant 0 : index
    %c0_6 = arith.constant 0 : index
    %9 = vector.load %arg4[%c0_5, %c0_6] : memref<32x32xbf16, #tpu.memory_space<vmem>>, vector<32x32xbf16>
    %cst_7 = arith.constant dense<0.000000e+00> : vector<8x32xf32>
    %10 = tpu.matmul %8, %9, %cst_7 {dimension_numbers = #tpu.dot_dimension_numbers<[1], [0], [0], [1], [0, 0, 1, 1], [], []>} : vector<8x32xbf16>, vector<32x32xbf16>, vector<8x32xf32> -> vector<8x32xf32>
    %c0_8 = arith.constant 0 : index
    %c0_9 = arith.constant 0 : index
    %11 = vector.load %arg5[%c0_8, %c0_9] : memref<1x32xf32, #tpu.memory_space<vmem>>, vector<1x32xf32>
    %12 = vector.broadcast %11 : vector<1x32xf32> to vector<8x32xf32>
    %13 = arith.addf %10, %12 : vector<8x32xf32>
    %14 = math.tanh %13 : vector<8x32xf32>
    %15 = arith.truncf %14 : vector<8x32xf32> to vector<8x32xbf16>
    %c0_10 = arith.constant 0 : index
    %c0_11 = arith.constant 0 : index
    %16 = vector.load %arg6[%c0_10, %c0_11] : memref<32x1xbf16, #tpu.memory_space<vmem>>, vector<32x1xbf16>
    %cst_12 = arith.constant dense<0.000000e+00> : vector<8x1xf32>
    %17 = tpu.matmul %15, %16, %cst_12 {dimension_numbers = #tpu.dot_dimension_numbers<[1], [0], [0], [1], [0, 0, 1, 1], [], []>} : vector<8x32xbf16>, vector<32x1xbf16>, vector<8x1xf32> -> vector<8x1xf32>
    %c0_i32 = arith.constant 0 : i32
    %18 = arith.cmpi eq, %arg0, %c0_i32 : i32
    %19 = arith.extui %18 : i1 to i32
    %c0_i32_13 = arith.constant 0 : i32
    %20 = arith.cmpi ne, %19, %c0_i32_13 : i32
    scf.if %20 {
      %24 = tpu.iota {dimensions = array<i32: 0>} : vector<8x1xi32>
      %c8_i32 = arith.constant 8 : i32
      %25 = arith.muli %arg0, %c8_i32 : i32
      %26 = vector.broadcast %25 : i32 to vector<8x1xi32>
      %27 = arith.addi %24, %26 : vector<8x1xi32>
      %c2_i32 = arith.constant 2 : i32
      %28 = vector.broadcast %c2_i32 : i32 to vector<8x1xi32>
      %29 = arith.cmpi slt, %27, %28 : vector<8x1xi32>
      %cst_16 = arith.constant 0.000000e+00 : f32
      %30 = vector.broadcast %cst_16 : f32 to vector<8x1xf32>
      %31 = arith.select %29, %17, %30 : vector<8x1xi1>, vector<8x1xf32>
      %32 = vector.shape_cast %31 : vector<8x1xf32> to vector<1x8x1xf32>
      %cst_17 = arith.constant dense<0.000000e+00> : vector<1xf32>
      %33 = vector.multi_reduction <add>, %32, %cst_17 [1, 2] : vector<1x8x1xf32> to vector<1xf32>
      %34 = vector.shape_cast %33 : vector<1xf32> to vector<1x1x1xf32>
      %35 = vector.extract %34[0, 0, 0] : f32 from vector<1x1x1xf32>
      %36 = vector.broadcast %35 : f32 to vector<1x1x128xf32>
      %c0_18 = arith.constant 0 : index
      %c0_19 = arith.constant 0 : index
      %c0_20 = arith.constant 0 : index
      %37 = vector.load %arg7[%c0_18, %c0_19, %c0_20] : memref<1x1x128xf32, #tpu.memory_space<vmem>>, vector<1x1x128xf32>
      tpu.vector_store %arg7[%c0_18, %c0_19, %c0_20], %36 {strides = array<i32>} : memref<1x1x128xf32, #tpu.memory_space<vmem>>, vector<1x1x128xf32>,
    } else {
    }
    %c0_i32_14 = arith.constant 0 : i32
    %21 = arith.cmpi ne, %arg0, %c0_i32_14 : i32
    %22 = arith.extui %21 : i1 to i32
    %c0_i32_15 = arith.constant 0 : i32
    %23 = arith.cmpi ne, %22, %c0_i32_15 : i32
    scf.if %23 {
      %24 = vector.shape_cast %17 : vector<8x1xf32> to vector<1x8x1xf32>
      %cst_16 = arith.constant dense<0.000000e+00> : vector<1xf32>
      %25 = vector.multi_reduction <add>, %24, %cst_16 [1, 2] : vector<1x8x1xf32> to vector<1xf32>
      %26 = vector.shape_cast %25 : vector<1xf32> to vector<1x1x1xf32>
      %27 = vector.extract %26[0, 0, 0] : f32 from vector<1x1x1xf32>
      %28 = vector.broadcast %27 : f32 to vector<1x1x128xf32>
      %c0_17 = arith.constant 0 : index
      %c0_18 = arith.constant 0 : index
      %c0_19 = arith.constant 0 : index
      %29 = vector.load %arg7[%c0_17, %c0_18, %c0_19] : memref<1x1x128xf32, #tpu.memory_space<vmem>>, vector<1x1x128xf32>
      tpu.vector_store %arg7[%c0_17, %c0_18, %c0_19], %28 {strides = array<i32>} : memref<1x1x128xf32, #tpu.memory_space<vmem>>, vector<1x1x128xf32>,
    } else {
    }
    return
  }
  func.func @transform_0(%arg0: i32) -> (i32, i32) {
    %c0_i32 = arith.constant 0 : i32
    %c0_i32_0 = arith.constant 0 : i32
    return %arg0, %c0_i32 : i32, i32
  }
  func.func @transform_1(%arg0: i32) -> (i32, i32) {
    %c0_i32 = arith.constant 0 : i32
    %c0_i32_0 = arith.constant 0 : i32
    %c0_i32_1 = arith.constant 0 : i32
    return %c0_i32, %c0_i32_0 : i32, i32
  }
  func.func @transform_2(%arg0: i32) -> (i32, i32) {
    %c0_i32 = arith.constant 0 : i32
    %c0_i32_0 = arith.constant 0 : i32
    %c0_i32_1 = arith.constant 0 : i32
    return %c0_i32, %c0_i32_0 : i32, i32
  }
  func.func @transform_3(%arg0: i32) -> (i32, i32) {
    %c0_i32 = arith.constant 0 : i32
    %c0_i32_0 = arith.constant 0 : i32
    %c0_i32_1 = arith.constant 0 : i32
    return %c0_i32, %c0_i32_0 : i32, i32
  }
  func.func @transform_4(%arg0: i32) -> (i32, i32) {
    %c0_i32 = arith.constant 0 : i32
    %c0_i32_0 = arith.constant 0 : i32
    %c0_i32_1 = arith.constant 0 : i32
    return %c0_i32, %c0_i32_0 : i32, i32
  }
  func.func @transform_5(%arg0: i32) -> (i32, i32) {
    %c0_i32 = arith.constant 0 : i32
    %c0_i32_0 = arith.constant 0 : i32
    %c0_i32_1 = arith.constant 0 : i32
    return %c0_i32, %c0_i32_0 : i32, i32
  }
  func.func @transform_6(%arg0: i32) -> (i32, i32, i32) {
    %c0_i32 = arith.constant 0 : i32
    %c0_i32_0 = arith.constant 0 : i32
    %c0_i32_1 = arith.constant 0 : i32
    return %arg0, %c0_i32, %c0_i32_0 : i32, i32, i32
  }
}

module attributes {stable_mosaic.version = 11 : i64} {
  func.func @_fwd_kernel(%arg0: i32, %arg1: memref<8x16xf32, #tpu.memory_space<vmem>>, %arg2: memref<16x32xbf16, #tpu.memory_space<vmem>>, %arg3: memref<1x32xf32, #tpu.memory_space<vmem>>, %arg4: memref<32x32xbf16, #tpu.memory_space<vmem>>, %arg5: memref<1x32xf32, #tpu.memory_space<vmem>>, %arg6: memref<32x8xbf16, #tpu.memory_space<vmem>>, %arg7: memref<1x8xf32, #tpu.memory_space<vmem>>, %arg8: memref<8x8xf32, #tpu.memory_space<vmem>>) attributes {dimension_semantics = [#tpu.dimension_semantics<parallel>], iteration_bounds = array<i64: 1>, scalar_prefetch = 0 : i64, scratch_operands = 0 : i64, tpu.core_type = #tpu.core_type<tc>, window_params = [{transform_indices = @transform_0, window_bounds = array<i64: 8, 16>}, {pipeline_mode = #tpu.pipeline_mode<synchronous>, transform_indices = @transform_1, window_bounds = array<i64: 16, 32>}, {pipeline_mode = #tpu.pipeline_mode<synchronous>, transform_indices = @transform_2, window_bounds = array<i64: 1, 32>}, {pipeline_mode = #tpu.pipeline_mode<synchronous>, transform_indices = @transform_3, window_bounds = array<i64: 32, 32>}, {pipeline_mode = #tpu.pipeline_mode<synchronous>, transform_indices = @transform_4, window_bounds = array<i64: 1, 32>}, {pipeline_mode = #tpu.pipeline_mode<synchronous>, transform_indices = @transform_5, window_bounds = array<i64: 32, 8>}, {pipeline_mode = #tpu.pipeline_mode<synchronous>, transform_indices = @transform_6, window_bounds = array<i64: 1, 8>}, {transform_indices = @transform_7, window_bounds = array<i64: 8, 8>}]} {
    %c0 = arith.constant 0 : index
    %c0_0 = arith.constant 0 : index
    %0 = vector.load %arg1[%c0, %c0_0] : memref<8x16xf32, #tpu.memory_space<vmem>>, vector<8x16xf32>
    %1 = arith.truncf %0 : vector<8x16xf32> to vector<8x16xbf16>
    %c0_1 = arith.constant 0 : index
    %c0_2 = arith.constant 0 : index
    %2 = vector.load %arg2[%c0_1, %c0_2] : memref<16x32xbf16, #tpu.memory_space<vmem>>, vector<16x32xbf16>
    %cst = arith.constant dense<0.000000e+00> : vector<8x32xf32>
    %3 = tpu.matmul %1, %2, %cst {dimension_numbers = #tpu.dot_dimension_numbers<[1], [0], [0], [1], [0, 0, 1, 1], [], []>} : vector<8x16xbf16>, vector<16x32xbf16>, vector<8x32xf32> -> vector<8x32xf32>
    %c0_3 = arith.constant 0 : index
    %c0_4 = arith.constant 0 : index
    %4 = vector.load %arg3[%c0_3, %c0_4] : memref<1x32xf32, #tpu.memory_space<vmem>>, vector<1x32xf32>
    %5 = vector.broadcast %4 : vector<1x32xf32> to vector<8x32xf32>
    %6 = arith.addf %3, %5 : vector<8x32xf32>
    %7 = math.tanh %6 : vector<8x32xf32>
    %8 = arith.truncf %7 : vector<8x32xf32> to vector<8x32xbf16>
    %c0_5 = arith.constant 0 : index
    %c0_6 = arith.constant 0 : index
    %9 = vector.load %arg4[%c0_5, %c0_6] : memref<32x32xbf16, #tpu.memory_space<vmem>>, vector<32x32xbf16>
    %cst_7 = arith.constant dense<0.000000e+00> : vector<8x32xf32>
    %10 = tpu.matmul %8, %9, %cst_7 {dimension_numbers = #tpu.dot_dimension_numbers<[1], [0], [0], [1], [0, 0, 1, 1], [], []>} : vector<8x32xbf16>, vector<32x32xbf16>, vector<8x32xf32> -> vector<8x32xf32>
    %c0_8 = arith.constant 0 : index
    %c0_9 = arith.constant 0 : index
    %11 = vector.load %arg5[%c0_8, %c0_9] : memref<1x32xf32, #tpu.memory_space<vmem>>, vector<1x32xf32>
    %12 = vector.broadcast %11 : vector<1x32xf32> to vector<8x32xf32>
    %13 = arith.addf %10, %12 : vector<8x32xf32>
    %14 = math.tanh %13 : vector<8x32xf32>
    %15 = arith.truncf %14 : vector<8x32xf32> to vector<8x32xbf16>
    %c0_10 = arith.constant 0 : index
    %c0_11 = arith.constant 0 : index
    %16 = vector.load %arg6[%c0_10, %c0_11] : memref<32x8xbf16, #tpu.memory_space<vmem>>, vector<32x8xbf16>
    %cst_12 = arith.constant dense<0.000000e+00> : vector<8x8xf32>
    %17 = tpu.matmul %15, %16, %cst_12 {dimension_numbers = #tpu.dot_dimension_numbers<[1], [0], [0], [1], [0, 0, 1, 1], [], []>} : vector<8x32xbf16>, vector<32x8xbf16>, vector<8x8xf32> -> vector<8x8xf32>
    %c0_13 = arith.constant 0 : index
    %c0_14 = arith.constant 0 : index
    %18 = vector.load %arg7[%c0_13, %c0_14] : memref<1x8xf32, #tpu.memory_space<vmem>>, vector<1x8xf32>
    %19 = vector.broadcast %18 : vector<1x8xf32> to vector<8x8xf32>
    %20 = arith.addf %17, %19 : vector<8x8xf32>
    %c0_15 = arith.constant 0 : index
    %c0_16 = arith.constant 0 : index
    %21 = vector.load %arg8[%c0_15, %c0_16] : memref<8x8xf32, #tpu.memory_space<vmem>>, vector<8x8xf32>
    tpu.vector_store %arg8[%c0_15, %c0_16], %20 {strides = array<i32>} : memref<8x8xf32, #tpu.memory_space<vmem>>, vector<8x8xf32>,
    return
  }
  func.func @transform_0(%arg0: i32) -> (i32, i32) {
    %c0_i32 = arith.constant 0 : i32
    %c0_i32_0 = arith.constant 0 : i32
    return %arg0, %c0_i32 : i32, i32
  }
  func.func @transform_1(%arg0: i32) -> (i32, i32) {
    %c0_i32 = arith.constant 0 : i32
    %c0_i32_0 = arith.constant 0 : i32
    %c0_i32_1 = arith.constant 0 : i32
    return %c0_i32, %c0_i32_0 : i32, i32
  }
  func.func @transform_2(%arg0: i32) -> (i32, i32) {
    %c0_i32 = arith.constant 0 : i32
    %c0_i32_0 = arith.constant 0 : i32
    %c0_i32_1 = arith.constant 0 : i32
    return %c0_i32, %c0_i32_0 : i32, i32
  }
  func.func @transform_3(%arg0: i32) -> (i32, i32) {
    %c0_i32 = arith.constant 0 : i32
    %c0_i32_0 = arith.constant 0 : i32
    %c0_i32_1 = arith.constant 0 : i32
    return %c0_i32, %c0_i32_0 : i32, i32
  }
  func.func @transform_4(%arg0: i32) -> (i32, i32) {
    %c0_i32 = arith.constant 0 : i32
    %c0_i32_0 = arith.constant 0 : i32
    %c0_i32_1 = arith.constant 0 : i32
    return %c0_i32, %c0_i32_0 : i32, i32
  }
  func.func @transform_5(%arg0: i32) -> (i32, i32) {
    %c0_i32 = arith.constant 0 : i32
    %c0_i32_0 = arith.constant 0 : i32
    %c0_i32_1 = arith.constant 0 : i32
    return %c0_i32, %c0_i32_0 : i32, i32
  }
  func.func @transform_6(%arg0: i32) -> (i32, i32) {
    %c0_i32 = arith.constant 0 : i32
    %c0_i32_0 = arith.constant 0 : i32
    %c0_i32_1 = arith.constant 0 : i32
    return %c0_i32, %c0_i32_0 : i32, i32
  }
  func.func @transform_7(%arg0: i32) -> (i32, i32) {
    %c0_i32 = arith.constant 0 : i32
    %c0_i32_0 = arith.constant 0 : i32
    return %arg0, %c0_i32 : i32, i32
  }
}

</mosaic_0001>

<bundles_post_ra>
// kernel: dueling_net.2
= control target key start
LH: loop header
LB: loop body
LE: loop exit
PB: predicated region body
PF: predicated region fallthrough
CT: control target
= control target key end

     0   :  { %v313_v0 = vmov 0.0   ;;  %vm314_vm0 = vmmov 0   ;;  %vm41_vm1 = vcmask 130048   ;;  %vm110_vm2 = vcmask 261120   ;;  %s379_s1 = inlined_call_operand.vmem [shape: bf16[16,32], index: 1, kind: input, shape index: {}]   ;;  %s380_s0 = inlined_call_operand.vmem [shape: f32[8,16], index: 0, kind: input, shape index: {}]   ;;  %s381_s3 = inlined_call_operand.vmem [shape: bf16[32,32], index: 3, kind: input, shape index: {}]   ;;  %s382_s2 = inlined_call_operand.vmem [shape: f32[1,32], index: 2, kind: input, shape index: {}]   ;;  %s383_s5 = inlined_call_operand.vmem [shape: bf16[32,1], index: 5, kind: input, shape index: {}]   ;;  %s384_s4 = inlined_call_operand.vmem [shape: f32[1,32], index: 4, kind: input, shape index: {}]   ;;  %s385_s6 = inlined_call_operand.vmem [shape: f32[1,1,128], index: 6, kind: output, shape index: {}]  }
   0x1   :  { %278 = vmatprep.subr.bf16.mxu0 %v313_v0  ;;  %v304_v1 = vld [vmem:[%s379_s1] sm:$0xff]   ;;  %280 = vmatprep.mubr.msk.bf16.mxu0 %vm314_vm0, %v313_v0  ;;  %v306_v5 = vld [vmem:[%s381_s3 + $0x8] sm:$0xff]   ;;  %v219_v24 = vlaneseq  ;;  %vm226_vm4 = vcmask 7168  }
   0x2   :  { %v24_v2 = vld [vmem:[%s380_s0] sm:$0xff]  ;;  %284 = vmatprep.subr.bf16.mxu1 %v313_v0  ;;  %288 = vmatprep.mubr.msk.bf16.mxu1 %vm314_vm0, %v313_v0  ;;  %v308_v15 = vld [vmem:[%s383_s5 + $0x8] sm:$0xff]  }
   0x3   :  { %279 = vmatpush3.bf16.msra.mxu0 %v304_v1  ;;  %v25_v3 = vpack.c.bf16 %v24_v2, %v24_v2  ;;  %v305_v4 = vld [vmem:[%s381_s3] sm:$0xff]   ;;  %v220_v25 = vshrl.u32 %v219_v24, 7 }
   0x4   :  { %292 = vmatprep.subr.bf16.mxu0 %v313_v0  ;;  %285 = vmatpush3.bf16.msra.mxu1 %v305_v4  ;;  %v260_v6 = vld [vmem:[%s382_s2] ss:$0 sm:$0xff] }
   0x5   :  { %286 = vmatprep.subr.bf16.mxu1 %v313_v0  ;;  %v307_v14 = vld [vmem:[%s383_s5] sm:$0xff]   ;;  %vm224_vm3 = vcmp.lt.s32.totalorder %v220_v25, 2 }
   0x6   :  { %281 = vmatmul.mubr.msk.bf16.vlgmr.msra.gmra.mrb[0].mxu0 %vm41_vm1, %v25_v3  ;;  %v263_v16 = vld [vmem:[%s384_s4] ss:$0 sm:$0xff] }
   0x7   :  { %296 = vmatprep.mubr.msk.bf16.mxu0 %vm314_vm0, %v313_v0  ;;  %293 = vmatpush3.bf16.msra.mxu0 %v307_v14 }
   0x8   :  { %287 = vmatpush3.bf16.msra.mxu1 %v306_v5  ;;  %294 = vmatprep.subr.bf16.mxu0 %v313_v0 }
   0xb   :  { %295 = vmatpush3.bf16.msra.mxu0 %v308_v15 }
  0xd9   :  { %v79_v7 = vpop.f32.mrb[0].mxu0 }
  0xda   :  { %v80_v8 = vadd.f32 %v260_v6, %v79_v7  ;;  %v282_v9 = vpop.f32.mrb[1].mxu0 }
  0xdb   :  { %v82_v10 = vpop.f32.mrb[2].mxu0 }
  0xdc   :  { %309 = vtanh.f32 %v80_v8  ;;  %v283_v11 = vpop.f32.mrb[3].mxu0 }
  0xe6   :  { %v310_v12 = vpop.eup %309 }
  0xe7   :  { %v86_v13 = vpack.c.bf16 %v310_v12, %v310_v12 }
  0xe9   :  { %289 = vmatmul.mubr.msk.bf16.vlgmr.msra.gmra.mrb[0].mxu1 %vm110_vm2, %v86_v13 }
 0x1bc   :  { %v148_v17 = vpop.f32.mrb[0].mxu1 }
 0x1bd   :  { %v149_v18 = vadd.f32 %v263_v16, %v148_v17  ;;  %v290_v19 = vpop.f32.mrb[1].mxu1 }
 0x1be   :  { %v151_v20 = vpop.f32.mrb[2].mxu1 }
 0x1bf   :  { %311 = vtanh.f32 %v149_v18  ;;  %v291_v21 = vpop.f32.mrb[3].mxu1 }
 0x1c9   :  { %v312_v22 = vpop.eup %311 }
 0x1ca   :  { %v155_v23 = vpack.c.bf16 %v312_v22, %v312_v22 }
 0x1cc   :  { %297 = vmatmul.mubr.msk.bf16.vlgmr.msra.gmra.mrb[4].mxu0 %vm110_vm2, %v155_v23 }
 0x29f   :  { %v209_v26 = vpop.f32.mrb[4].mxu0 }
 0x2a0   :  { %v225_v27 = vsel %vm224_vm3, %v209_v26, 0.0  ;;  %v298_v28 = vpop.f32.mrb[5].mxu0 }
 0x2a1   :  { %v212_v29 = vpop.f32.mrb[6].mxu0  ;;  %v227_v30 = vsel %vm226_vm4, %v225_v27, 0.0 }
 0x2a2   :  { %v299_v31 = vpop.f32.mrb[7].mxu0  ;;  %228 = vadd.xlane.f32.xlu0 %v227_v30 }
 0x32f   :  { %v229_v32 = vpop.xlane.xlu0 %228 }
 0x330   :  { %v230_v33 = vrot.slane %v229_v32, 4 }
 0x332   :  { %v231_v34 = vadd.f32 %v230_v33, %v229_v32 }
 0x334   :  { %v232_v35 = vrot.slane %v231_v34, 2 }
 0x336   :  { %v233_v36 = vadd.f32 %v232_v35, %v231_v34 }
 0x338   :  { %v234_v37 = vrot.slane %v233_v36, 1 }
 0x33a   :  { %v235_v38 = vadd.f32 %v234_v37, %v233_v36 }
 0x33c   :  { %300 = vpush %v235_v38 }
 0x36d   :  { %s301_s4 = spop %300 }
 0x36e   :  { %v237_v39 = vstv %s301_s4 }
 0x36f   :  { %238 = vst [vmem:[%s385_s6] sm:$0x1] %v237_v39 }

// kernel: dueling_net.3
= control target key start
LH: loop header
LB: loop body
LE: loop exit
PB: predicated region body
PF: predicated region fallthrough
CT: control target
= control target key end

     0   :  { %v283_v0 = vmov 0.0   ;;  %vm284_vm0 = vmmov 0   ;;  %vm44_vm1 = vcmask 130048   ;;  %vm113_vm2 = vcmask 261120   ;;  %s357_s1 = inlined_call_operand.vmem [shape: bf16[16,32], index: 1, kind: input, shape index: {}]   ;;  %s358_s0 = inlined_call_operand.vmem [shape: f32[8,16], index: 0, kind: input, shape index: {}]   ;;  %s359_s3 = inlined_call_operand.vmem [shape: bf16[32,32], index: 3, kind: input, shape index: {}]   ;;  %s360_s2 = inlined_call_operand.vmem [shape: f32[1,32], index: 2, kind: input, shape index: {}]   ;;  %s361_s5 = inlined_call_operand.vmem [shape: bf16[32,8], index: 5, kind: input, shape index: {}]   ;;  %s362_s4 = inlined_call_operand.vmem [shape: f32[1,32], index: 4, kind: input, shape index: {}]   ;;  %s363_s6 = inlined_call_operand.vmem [shape: f32[1,8], index: 6, kind: input, shape index: {}]   ;;  %s364_s7 = inlined_call_operand.vmem [shape: f32[8,8], index: 7, kind: output, shape index: {}]  }
   0x1   :  { %250 = vmatprep.subr.bf16.mxu0 %v283_v0  ;;  %v274_v1 = vld [vmem:[%s357_s1] sm:$0xff]   ;;  %252 = vmatprep.mubr.msk.bf16.mxu0 %vm284_vm0, %v283_v0  ;;  %v276_v5 = vld [vmem:[%s359_s3 + $0x8] sm:$0xff]   ;;  %vm225_vm3 = vcmask 64512  }
   0x2   :  { %v27_v2 = vld [vmem:[%s358_s0] sm:$0xff]  ;;  %256 = vmatprep.subr.bf16.mxu1 %v283_v0  ;;  %260 = vmatprep.mubr.msk.bf16.mxu1 %vm284_vm0, %v283_v0  ;;  %v278_v15 = vld [vmem:[%s361_s5 + $0x8] sm:$0xff]  }
   0x3   :  { %251 = vmatpush3.bf16.msra.mxu0 %v274_v1  ;;  %v28_v3 = vpack.c.bf16 %v27_v2, %v27_v2  ;;  %v275_v4 = vld [vmem:[%s359_s3] sm:$0xff]  }
   0x4   :  { %264 = vmatprep.subr.bf16.mxu0 %v283_v0  ;;  %257 = vmatpush3.bf16.msra.mxu1 %v275_v4  ;;  %v231_v6 = vld [vmem:[%s360_s2] ss:$0 sm:$0xff] }
   0x5   :  { %258 = vmatprep.subr.bf16.mxu1 %v283_v0  ;;  %v277_v14 = vld [vmem:[%s361_s5] sm:$0xff]  }
   0x6   :  { %253 = vmatmul.mubr.msk.bf16.vlgmr.msra.gmra.mrb[0].mxu0 %vm44_vm1, %v28_v3  ;;  %v234_v16 = vld [vmem:[%s362_s4] ss:$0 sm:$0xff] }
   0x7   :  { %268 = vmatprep.mubr.msk.bf16.mxu0 %vm284_vm0, %v283_v0  ;;  %265 = vmatpush3.bf16.msra.mxu0 %v277_v14  ;;  %v238_v24 = vld [vmem:[%s363_s6] ss:$0 sm:$0xff] }
   0x8   :  { %259 = vmatpush3.bf16.msra.mxu1 %v276_v5  ;;  %266 = vmatprep.subr.bf16.mxu0 %v283_v0 }
   0xb   :  { %267 = vmatpush3.bf16.msra.mxu0 %v278_v15 }
  0xd9   :  { %v82_v7 = vpop.f32.mrb[0].mxu0 }
  0xda   :  { %v83_v8 = vadd.f32 %v231_v6, %v82_v7  ;;  %v254_v9 = vpop.f32.mrb[1].mxu0 }
  0xdb   :  { %v85_v10 = vpop.f32.mrb[2].mxu0 }
  0xdc   :  { %279 = vtanh.f32 %v83_v8  ;;  %v255_v11 = vpop.f32.mrb[3].mxu0 }
  0xe6   :  { %v280_v12 = vpop.eup %279 }
  0xe7   :  { %v89_v13 = vpack.c.bf16 %v280_v12, %v280_v12 }
  0xe9   :  { %261 = vmatmul.mubr.msk.bf16.vlgmr.msra.gmra.mrb[0].mxu1 %vm113_vm2, %v89_v13 }
 0x1bc   :  { %v151_v17 = vpop.f32.mrb[0].mxu1 }
 0x1bd   :  { %v152_v18 = vadd.f32 %v234_v16, %v151_v17  ;;  %v262_v19 = vpop.f32.mrb[1].mxu1 }
 0x1be   :  { %v154_v20 = vpop.f32.mrb[2].mxu1 }
 0x1bf   :  { %281 = vtanh.f32 %v152_v18  ;;  %v263_v21 = vpop.f32.mrb[3].mxu1 }
 0x1c9   :  { %v282_v22 = vpop.eup %281 }
 0x1ca   :  { %v158_v23 = vpack.c.bf16 %v282_v22, %v282_v22 }
 0x1cc   :  { %269 = vmatmul.mubr.msk.bf16.vlgmr.msra.gmra.mrb[4].mxu0 %vm113_vm2, %v158_v23 }
 0x29f   :  { %v219_v25 = vpop.f32.mrb[4].mxu0 }
 0x2a0   :  { %v220_v26 = vadd.f32 %v238_v24, %v219_v25  ;;  %v270_v27 = vpop.f32.mrb[5].mxu0 }
 0x2a1   :  { %v222_v28 = vpop.f32.mrb[6].mxu0 }
 0x2a2   :  { %226 = vst.msk [vmem:[%s364_s7] sm:$0xff] %vm225_vm3, %v220_v26  ;;  %v271_v29 = vpop.f32.mrb[7].mxu0 }

</bundles_post_ra>
